<compile_context>
chip_gen: v7x
topology: tpu7x:2x2x1
jax: 0.10.0
libtpu: 0.0.40
codegen_flags: <defaults>
</compile_context>

<pallas_src>
import jax
import jax.numpy as jnp
from jax.experimental import pallas as pl
from jax.experimental.pallas import tpu as pltpu


def _round_up(x, m):
    return ((x + m - 1) // m) * m


def _tile_config():
    """Generation-dispatched tiling / VMEM config (v5e/v6e: 128 MiB, v7x: 64 MiB)."""
    try:
        vmem_bytes = pltpu.get_tpu_info().vmem_capacity_bytes
    except Exception:
        vmem_bytes = 64 * 1024 * 1024  # detection unavailable -> conservative (v7x-safe)
    if vmem_bytes >= 128 * 1024 * 1024:  # v5e / v6e
        return {"tn_max": 8192, "tm_max": 256, "vmem_limit_bytes": 96 * 1024 * 1024}
    # v7x: 64 MiB physical VMEM
    return {"tn_max": 4096, "tm_max": 256, "vmem_limit_bytes": 56 * 1024 * 1024}


def nextword_mlp_kernel(x_ref, w1_ref, b1_ref, w2_ref, b2_ref, o_ref):
    # x_ref:  (TM, Din_p) bf16     w1_ref: (Din_p, H_p) bf16    b1_ref: (1, H_p) f32
    # w2_ref: (H_p, TN)   bf16     b2_ref: (1, TN) f32          o_ref:  (TM, TN)
    # Grid: (batch tiles, vocab tiles), both "parallel".  The first GEMM is
    # recomputed per vocab tile (x/W1 stay VMEM-resident via constant index maps);
    # its cost is negligible next to the W2 HBM stream and this keeps each grid
    # point independent so v7x can shard the vocab axis across both TensorCores.
    h = jnp.dot(x_ref[...], w1_ref[...], preferred_element_type=jnp.float32)
    h = jnp.maximum(h + b1_ref[...], 0.0).astype(jnp.bfloat16)   # ReLU (activation_fn='ReLU')
    logits = jnp.dot(h, w2_ref[...], preferred_element_type=jnp.float32)
    o_ref[...] = (logits + b2_ref[...]).astype(o_ref.dtype)


def prepare_params(emb_table, w1, b1, w2, b2):
    """One-time pad + cast of the parameters (hoisted off the per-call path)."""
    cfg = _tile_config()
    d_in, hidden = w1.shape
    vocab = w2.shape[1]

    din_p = _round_up(d_in, 128)
    h_p = _round_up(hidden, 128)
    v_p = _round_up(vocab, 256)                 # multiple of 256 for the 256-wide MXU
    tn = min(v_p, cfg["tn_max"])
    v_p = _round_up(v_p, tn)

    return {
        "emb": emb_table.astype(jnp.bfloat16),
        "w1": jnp.pad(w1, ((0, din_p - d_in), (0, h_p - hidden))).astype(jnp.bfloat16),
        "b1": jnp.pad(b1, (0, h_p - hidden)).reshape(1, h_p).astype(jnp.float32),
        "w2": jnp.pad(w2, ((0, h_p - hidden), (0, v_p - vocab))).astype(jnp.bfloat16),
        "b2": jnp.pad(b2, (0, v_p - vocab)).reshape(1, v_p).astype(jnp.float32),
        "d_in": d_in, "din_p": din_p, "h_p": h_p,
        "vocab": vocab, "v_p": v_p, "tn": tn,
        "tm_max": cfg["tm_max"], "vmem_limit_bytes": cfg["vmem_limit_bytes"],
    }


def nextword_forward(x_tokens, params, out_dtype=jnp.float32):
    """Embedding gather/flatten in JAX glue + tiled Pallas kernel for the MLP."""
    B, _ = x_tokens.shape
    din_p, h_p = params["din_p"], params["h_p"]
    v_p, tn = params["v_p"], params["tn"]

    # Embedding lookup + flatten (x.view(x.shape[0], -1) in the PyTorch module).
    x_flat = jnp.take(params["emb"], x_tokens, axis=0).reshape(B, -1)   # bf16 (B, d_in)
    assert x_flat.shape[1] == params["d_in"]

    # Batch tile: multiple of 16 (bf16 sublane packing), up to tm_max.
    tm = min(_round_up(B, 16), params["tm_max"])
    b_p = _round_up(B, tm)
    x_p = jnp.pad(x_flat, ((0, b_p - B), (0, din_p - params["d_in"])))

    grid = (b_p // tm, v_p // tn)

    out = pl.pallas_call(
        nextword_mlp_kernel,
        out_shape=jax.ShapeDtypeStruct((b_p, v_p), out_dtype),
        grid_spec=pltpu.PrefetchScalarGridSpec(
            num_scalar_prefetch=0,
            grid=grid,
            in_specs=[
                pl.BlockSpec((tm, din_p), lambda i, j: (i, 0)),   # x tile (per batch tile)
                pl.BlockSpec((din_p, h_p), lambda i, j: (0, 0)),  # W1 (resident)
                pl.BlockSpec((1, h_p), lambda i, j: (0, 0)),      # b1 (resident)
                pl.BlockSpec((h_p, tn), lambda i, j: (0, j)),     # W2 (streamed over vocab)
                pl.BlockSpec((1, tn), lambda i, j: (0, j)),       # b2 (streamed over vocab)
            ],
            out_specs=pl.BlockSpec((tm, tn), lambda i, j: (i, j)),
        ),
        compiler_params=pltpu.CompilerParams(
            dimension_semantics=("parallel", "parallel"),
            vmem_limit_bytes=params["vmem_limit_bytes"],
        ),
    )(x_p, params["w1"], params["b1"], params["w2"], params["b2"])

    if b_p != B or v_p != params["vocab"]:
        out = out[:B, :params["vocab"]]
    return out


def init_params(key, vocab_size, emb_dim, block_size, hidden_size):
    """Deterministic synthetic parameters (shapes match the nn.Module __init__)."""
    k_emb, k_w1, k_b1, k_w2, k_b2 = jax.random.split(key, 5)
    d_in = block_size * emb_dim
    emb_table = jax.random.normal(k_emb, (vocab_size, emb_dim), jnp.float32)
    # Stored (in, out): transpose of PyTorch nn.Linear weight layout (out, in).
    w1 = jax.random.normal(k_w1, (d_in, hidden_size), jnp.float32) * (1.0 / jnp.sqrt(d_in))
    b1 = jax.random.normal(k_b1, (hidden_size,), jnp.float32) * 0.01
    w2 = jax.random.normal(k_w2, (hidden_size, vocab_size), jnp.float32) * (1.0 / jnp.sqrt(hidden_size))
    b2 = jax.random.normal(k_b2, (vocab_size,), jnp.float32) * 0.01
    return emb_table, w1, b1, w2, b2


if __name__ == "__main__":
    # Small shapes consistent with the module's forward: x is (batch, block_size) int ids.
    batch = 8
    block_size = 5           # one of the selectbox options [5, 10, 15]
    vocab_size = 1000        # deliberately not a multiple of 128/256 to exercise padding/slicing
    emb_dim = 32
    hidden_size = 256        # scaled-down stand-in for the script's 1024

    key = jax.random.PRNGKey(0)
    k_params, k_x = jax.random.split(key)
    emb_table, w1, b1, w2, b2 = init_params(
        k_params, vocab_size, emb_dim, block_size, hidden_size)
    x_tokens = jax.random.randint(k_x, (batch, block_size), 0, vocab_size, jnp.int32)

    params = prepare_params(emb_table, w1, b1, w2, b2)   # one-time pad + bf16 cast
    logits = nextword_forward(x_tokens, params)
    jax.block_until_ready(logits)

    # Reference mirroring the kernel's bf16-operand / f32-accumulate numerics.
    x_flat = jnp.take(params["emb"], x_tokens, axis=0).reshape(batch, -1)   # bf16
    h_ref = jnp.maximum(
        jnp.dot(x_flat, w1.astype(jnp.bfloat16),
                preferred_element_type=jnp.float32) + b1, 0.0).astype(jnp.bfloat16)
    ref = jnp.dot(h_ref, w2.astype(jnp.bfloat16),
                  preferred_element_type=jnp.float32) + b2

    assert logits.shape == (batch, vocab_size)
    assert jnp.allclose(logits, ref, atol=1e-2, rtol=1e-2), float(jnp.max(jnp.abs(logits - ref)))
    # Sanity vs. full-f32 math (difference is bf16 rounding of operands only).
    x_flat_f32 = jnp.take(emb_table, x_tokens, axis=0).reshape(batch, -1)
    ref_f32 = jnp.maximum(x_flat_f32 @ w1 + b1, 0.0) @ w2 + b2
    assert float(jnp.max(jnp.abs(logits - ref_f32))) < 0.25

    print("KERNEL_OK")
</pallas_src>

<mosaic_0001>
module attributes {stable_mosaic.version = 11 : i64} {
  func.func @nextword_mlp_kernel(%arg0: i32, %arg1: i32, %arg2: memref<16x256xbf16, #tpu.memory_space<vmem>>, %arg3: memref<256x256xbf16, #tpu.memory_space<vmem>>, %arg4: memref<1x256xf32, #tpu.memory_space<vmem>>, %arg5: memref<256x1024xbf16, #tpu.memory_space<vmem>>, %arg6: memref<1x1024xf32, #tpu.memory_space<vmem>>, %arg7: memref<16x1024xf32, #tpu.memory_space<vmem>>) attributes {dimension_semantics = [#tpu.dimension_semantics<parallel>, #tpu.dimension_semantics<parallel>], iteration_bounds = array<i64: 1, 1>, scalar_prefetch = 0 : i64, scratch_operands = 0 : i64, tpu.core_type = #tpu.core_type<tc>, window_params = [{transform_indices = @transform_0, window_bounds = array<i64: 16, 256>}, {pipeline_mode = #tpu.pipeline_mode<synchronous>, transform_indices = @transform_1, window_bounds = array<i64: 256, 256>}, {pipeline_mode = #tpu.pipeline_mode<synchronous>, transform_indices = @transform_2, window_bounds = array<i64: 1, 256>}, {transform_indices = @transform_3, window_bounds = array<i64: 256, 1024>}, {transform_indices = @transform_4, window_bounds = array<i64: 1, 1024>}, {transform_indices = @transform_5, window_bounds = array<i64: 16, 1024>}]} {
    %c0 = arith.constant 0 : index
    %c0_0 = arith.constant 0 : index
    %0 = vector.load %arg2[%c0, %c0_0] : memref<16x256xbf16, #tpu.memory_space<vmem>>, vector<16x256xbf16>
    %c0_1 = arith.constant 0 : index
    %c0_2 = arith.constant 0 : index
    %1 = vector.load %arg3[%c0_1, %c0_2] : memref<256x256xbf16, #tpu.memory_space<vmem>>, vector<256x256xbf16>
    %cst = arith.constant dense<0.000000e+00> : vector<16x256xf32>
    %2 = tpu.matmul %0, %1, %cst {dimension_numbers = #tpu.dot_dimension_numbers<[1], [0], [0], [1], [0, 0, 1, 1], [], []>} : vector<16x256xbf16>, vector<256x256xbf16>, vector<16x256xf32> -> vector<16x256xf32>
    %c0_3 = arith.constant 0 : index
    %c0_4 = arith.constant 0 : index
    %3 = vector.load %arg4[%c0_3, %c0_4] : memref<1x256xf32, #tpu.memory_space<vmem>>, vector<1x256xf32>
    %4 = vector.broadcast %3 : vector<1x256xf32> to vector<16x256xf32>
    %5 = arith.addf %2, %4 : vector<16x256xf32>
    %cst_5 = arith.constant 0.000000e+00 : f32
    %6 = vector.broadcast %cst_5 : f32 to vector<16x256xf32>
    %7 = arith.maximumf %5, %6 : vector<16x256xf32>
    %8 = arith.truncf %7 : vector<16x256xf32> to vector<16x256xbf16>
    %c0_6 = arith.constant 0 : index
    %c0_7 = arith.constant 0 : index
    %9 = vector.load %arg5[%c0_6, %c0_7] : memref<256x1024xbf16, #tpu.memory_space<vmem>>, vector<256x1024xbf16>
    %cst_8 = arith.constant dense<0.000000e+00> : vector<16x1024xf32>
    %10 = tpu.matmul %8, %9, %cst_8 {dimension_numbers = #tpu.dot_dimension_numbers<[1], [0], [0], [1], [0, 0, 1, 1], [], []>} : vector<16x256xbf16>, vector<256x1024xbf16>, vector<16x1024xf32> -> vector<16x1024xf32>
    %c0_9 = arith.constant 0 : index
    %c0_10 = arith.constant 0 : index
    %11 = vector.load %arg6[%c0_9, %c0_10] : memref<1x1024xf32, #tpu.memory_space<vmem>>, vector<1x1024xf32>
    %12 = vector.broadcast %11 : vector<1x1024xf32> to vector<16x1024xf32>
    %13 = arith.addf %10, %12 : vector<16x1024xf32>
    %c0_11 = arith.constant 0 : index
    %c0_12 = arith.constant 0 : index
    %14 = vector.load %arg7[%c0_11, %c0_12] : memref<16x1024xf32, #tpu.memory_space<vmem>>, vector<16x1024xf32>
    tpu.vector_store %arg7[%c0_11, %c0_12], %13 {strides = array<i32>} : memref<16x1024xf32, #tpu.memory_space<vmem>>, vector<16x1024xf32>,
    return
  }
  func.func @transform_0(%arg0: i32, %arg1: i32) -> (i32, i32) {
    %c0_i32 = arith.constant 0 : i32
    %c0_i32_0 = arith.constant 0 : i32
    return %arg0, %c0_i32 : i32, i32
  }
  func.func @transform_1(%arg0: i32, %arg1: i32) -> (i32, i32) {
    %c0_i32 = arith.constant 0 : i32
    %c0_i32_0 = arith.constant 0 : i32
    %c0_i32_1 = arith.constant 0 : i32
    return %c0_i32, %c0_i32_0 : i32, i32
  }
  func.func @transform_2(%arg0: i32, %arg1: i32) -> (i32, i32) {
    %c0_i32 = arith.constant 0 : i32
    %c0_i32_0 = arith.constant 0 : i32
    %c0_i32_1 = arith.constant 0 : i32
    return %c0_i32, %c0_i32_0 : i32, i32
  }
  func.func @transform_3(%arg0: i32, %arg1: i32) -> (i32, i32) {
    %c0_i32 = arith.constant 0 : i32
    %c0_i32_0 = arith.constant 0 : i32
    return %c0_i32, %arg1 : i32, i32
  }
  func.func @transform_4(%arg0: i32, %arg1: i32) -> (i32, i32) {
    %c0_i32 = arith.constant 0 : i32
    %c0_i32_0 = arith.constant 0 : i32
    return %c0_i32, %arg1 : i32, i32
  }
  func.func @transform_5(%arg0: i32, %arg1: i32) -> (i32, i32) {
    %c0_i32 = arith.constant 0 : i32
    return %arg0, %arg1 : i32, i32
  }
}

</mosaic_0001>

<bundles_post_ra>
// kernel: tpu_custom_call.1
= control target key start
LH: loop header
LB: loop body
LE: loop exit
PB: predicated region body
PF: predicated region fallthrough
CT: control target
= control target key end

     0   :  { %10 = vsyncpa [#allocation3], 0  ;;  %s1785_s0 = inlined_call_operand.hbm [shape: bf16[16,256], index: 0, kind: input, shape index: {}]   ;;  %s1786_s1 = inlined_call_operand.hbm [shape: bf16[256,256], index: 1, kind: input, shape index: {}]   ;;  %s1787_s2 = inlined_call_operand.vmem [shape: f32[1,256], index: 2, kind: input, shape index: {}]   ;;  %s1788_s3 = inlined_call_operand.hbm [shape: bf16[256,1024], index: 3, kind: input, shape index: {}]   ;;  %s1789_s4 = inlined_call_operand.vmem [shape: f32[1,1024], index: 4, kind: input, shape index: {}]   ;;  %s1790_s5 = inlined_call_operand.hbm [shape: f32[16,1024], index: 5, kind: output, shape index: {}]  }
   0x1   :  { %11 = vsyncpa [#allocation6], 0 }
   0x2   :  { %12 = vsyncpa [#allocation4], 0  ;;  %s1660_s18 = smov [#allocation5]   ;;  %s1661_s20 = smov [#allocation2]  }
   0x3   :  { %s30_s19 = sshll.u32 %s1660_s18, 4  ;;  %s18_s21 = sshll.u32 %s1661_s20, 4  ;;  %s31_s19 = int_to_ptr.vmem [resolvable:$true] %s30_s19  ;;  %s1700_s21 = int_to_ptr.vmem [resolvable:$true] %s18_s21 }
   0x4   :  { %s1566_s24 = scalar_lea.hbm %s1786_s1, 4096 }
   0x5   :  { %p1567_p0 = scmp.ne.s32.totalorder %s1786_s1, %s1566_s24  ;;  %p1570_p1 = scmp.lt.u32.totalorder %s1566_s24, %s1786_s1 }
   0x7   :  { %p1572_p2 = pnand %p1570_p1, %p1567_p0 }
   0x9   :  { %1575 = shalt.err (!%p1572_p2)
}
   0xa   :  { %s1576_s29 = scalar_lea.vmem %s31_s19, 4096  ;;  %p1581_p4 = scmp.lt.s32.totalorder %s31_s19, %s31_s19 }
   0xb   :  { %p1577_p3 = scmp.ne.s32.totalorder %s31_s19, %s1576_s29  ;;  %p1582_p5 = scmp.lt.s32.totalorder %s1576_s29, %s1576_s29 }
   0xd   :  { %p1583_p6 = por %p1582_p5, %p1581_p4 }
   0xf   :  { %p1584_p7 = pnand %p1583_p6, %p1577_p3 }
  0x11   :  { %1587 = shalt.err (!%p1584_p7)
}
  0x12   :  { %s1662_s30 = smov 128   ;;  %s1663_s6 = smov 8  }
  0x13   :  { %36 = dma.hbm_to_vmem [thread:$0]  %s1786_s1, 4096, %s31_s19, [#allocation6], %s1662_s30, %s1662_s30, %s1663_s6  }
  0x14   :  { %s1588_s11 = scalar_lea.hbm %s1785_s0, 256 }
  0x15   :  { %p1589_p8 = scmp.ne.s32.totalorder %s1785_s0, %s1588_s11  ;;  %p1592_p9 = scmp.lt.u32.totalorder %s1588_s11, %s1785_s0 }
  0x17   :  { %p1594_p10 = pnand %p1592_p9, %p1589_p8 }
  0x19   :  { %1597 = shalt.err (!%p1594_p10)
}
  0x1a   :  { %s1598_s16 = scalar_lea.vmem %s1700_s21, 256  ;;  %p1603_p12 = scmp.lt.s32.totalorder %s1700_s21, %s1700_s21 }
  0x1b   :  { %p1599_p11 = scmp.ne.s32.totalorder %s1700_s21, %s1598_s16  ;;  %p1604_p13 = scmp.lt.s32.totalorder %s1598_s16, %s1598_s16 }
  0x1d   :  { %p1605_p0 = por %p1604_p13, %p1603_p12 }
  0x1f   :  { %p1606_p1 = pnand %p1605_p0, %p1599_p11 }
  0x21   :  { %1609 = shalt.err (!%p1606_p1)
}
  0x22   :  { %24 = dma.hbm_to_vmem [thread:$0]  %s1785_s0, 256, %s1700_s21, [#allocation3], %s1662_s30, %s1662_s30, %s1663_s6  }
  0x23   :  { %s1664_s18 = smov [#allocation7]   ;;  %s1610_s23 = scalar_lea.hbm %s1788_s3, 16384 }
  0x24   :  { %s44_s19 = sshll.u32 %s1664_s18, 4  ;;  %p1611_p2 = scmp.ne.s32.totalorder %s1788_s3, %s1610_s23  ;;  %s45_s19 = int_to_ptr.vmem [resolvable:$true] %s44_s19 }
  0x25   :  { %p1614_p3 = scmp.lt.u32.totalorder %s1610_s23, %s1788_s3 }
  0x27   :  { %p1616_p4 = pnand %p1614_p3, %p1611_p2 }
  0x29   :  { %1619 = shalt.err (!%p1616_p4)
}
  0x2a   :  { %s1620_s28 = scalar_lea.vmem %s45_s19, 16384  ;;  %p1625_p6 = scmp.lt.s32.totalorder %s45_s19, %s45_s19 }
  0x2b   :  { %p1621_p5 = scmp.ne.s32.totalorder %s45_s19, %s1620_s28  ;;  %p1626_p7 = scmp.lt.s32.totalorder %s1620_s28, %s1620_s28 }
  0x2d   :  { %p1627_p8 = por %p1626_p7, %p1625_p6 }
  0x2f   :  { %p1628_p9 = pnand %p1627_p8, %p1621_p5 }
  0x31   :  { %1631 = shalt.err (!%p1628_p9)
}
  0x32   :  { %s1665_s0 = smov 512   ;;  %s1666_s21 = smov 32  }
  0x33   :  { %50 = dma.hbm_to_vmem [thread:$0]  %s1788_s3, 16384, %s45_s19, [#allocation6], %s1665_s0, %s1665_s0, %s1666_s21  }
  0x34   :  { %1654 = dma.done.wait [#allocation3], 256  }
  0x35   :  { %1655 = vsyncadd [#allocation3], 4294967040 }
  0x36   :  { %1656 = dma.done.wait [#allocation6], 20480  }
  0x37   :  { %1657 = vsyncadd [#allocation6], 4294946816  ;;  %v1515_v0 = vld [vmem:[#allocation5 + $0x4] ss:$8 sps:$4 sm:$0xff]   ;;  %v1517_v1 = vld [vmem:[#allocation5] ss:$8 sps:$4 sm:$0xff]  }
  0x38   :  { %278 = vmatprep.subr.bf16.mxu0 %v1515_v0  ;;  %v1518_v2 = vld [vmem:[#allocation5 + $0x14] ss:$8 sps:$4 sm:$0xff]   ;;  %v1520_v3 = vld [vmem:[#allocation5 + $0x10] ss:$8 sps:$4 sm:$0xff]   ;;  %v1521_v4 = vld [vmem:[#allocation5 + $0x24] ss:$8 sps:$4 sm:$0xff]  }
  0x39   :  { %279 = vmatpush1.bf16.msra.mxu0 %v1517_v1  ;;  %v1523_v5 = vld [vmem:[#allocation5 + $0x20] ss:$8 sps:$4 sm:$0xff]   ;;  %v1524_v6 = vld [vmem:[#allocation5 + $0x34] ss:$8 sps:$4 sm:$0xff]   ;;  %v1526_v7 = vld [vmem:[#allocation5 + $0x30] ss:$8 sps:$4 sm:$0xff]  }
  0x3a   :  { %280 = vmatprep.subr.bf16.mxu0 %v1518_v2  ;;  %v1527_v8 = vld [vmem:[#allocation5 + $0x44] ss:$8 sps:$4 sm:$0xff]   ;;  %v1529_v9 = vld [vmem:[#allocation5 + $0x40] ss:$8 sps:$4 sm:$0xff]   ;;  %v1530_v10 = vld [vmem:[#allocation5 + $0x54] ss:$8 sps:$4 sm:$0xff]  }
  0x3b   :  { %v1532_v11 = vld [vmem:[#allocation5 + $0x50] ss:$8 sps:$4 sm:$0xff]   ;;  %v1533_v12 = vld [vmem:[#allocation5 + $0x64] ss:$8 sps:$4 sm:$0xff]   ;;  %v1565_v13 = vld [vmem:[#allocation2 + $0x4] ss:$8 sps:$4 sm:$0xff]  }
  0x3c   :  { %v327_v14 = vld [vmem:[#allocation7] sm:$0xff]  ;;  %v1536_v17 = vld [vmem:[#allocation5 + $0x74] ss:$8 sps:$4 sm:$0xff]   ;;  %310 = vmatprep.mubr.bf16.mxu0 %v1565_v13  ;;  %v1538_v25 = vld [vmem:[#allocation5 + $0x70] ss:$8 sps:$4 sm:$0xff]  }
  0x3d   :  { %281 = vmatpush1.bf16.msra.mxu0 %v1520_v3  ;;  %v1535_v15 = vld [vmem:[#allocation5 + $0x60] ss:$8 sps:$4 sm:$0xff]   ;;  %v1539_v27 = vld [vmem:[#allocation5 + $0x84] ss:$8 sps:$4 sm:$0xff]   ;;  %v1542_v33 = vld [vmem:[#allocation5 + $0x94] ss:$8 sps:$4 sm:$0xff]  }
  0x3e   :  { %282 = vmatprep.subr.bf16.mxu0 %v1521_v4  ;;  %v331_v16 = vld [vmem:[#allocation7 + $0x20] sm:$0xff]  ;;  %v1544_v37 = vld [vmem:[#allocation5 + $0x90] ss:$8 sps:$4 sm:$0xff]   ;;  %v1548_v45 = vld [vmem:[#allocation5 + $0xb4] ss:$8 sps:$4 sm:$0xff]  }
  0x3f   :  { %v1378_v18 = vcombine.high %v327_v14, %v331_v16  ;;  %v335_v19 = vld [vmem:[#allocation7 + $0x40] sm:$0xff]  ;;  %v1377_v21 = vcombine.low %v327_v14, %v331_v16  ;;  %v1550_v49 = vld [vmem:[#allocation5 + $0xb0] ss:$8 sps:$4 sm:$0xff]   ;;  %v1554_v57 = vld [vmem:[#allocation5 + $0xd4] ss:$8 sps:$4 sm:$0xff]  }
  0x40   :  { %v339_v20 = vld [vmem:[#allocation7 + $0x60] sm:$0xff]  ;;  %v1556_v61 = vld [vmem:[#allocation5 + $0xd0] ss:$8 sps:$4 sm:$0xff]   ;;  %v336_v14 = vld [vmem:[#allocation7 + $0x48] sm:$0xff] }
  0x41   :  { %283 = vmatpush1.bf16.msra.mxu0 %v1523_v5  ;;  %v1386_v22 = vcombine.high %v335_v19, %v339_v20  ;;  %v343_v23 = vld [vmem:[#allocation7 + $0x80] sm:$0xff]  ;;  %1137 = vmatprep.subr.bf16.mxu1 %v1378_v18  ;;  %v1385_v26 = vcombine.low %v335_v19, %v339_v20  ;;  %v1560_v5 = vld [vmem:[#allocation5 + $0xf4] ss:$8 sps:$4 sm:$0xff]   ;;  %v340_v16 = vld [vmem:[#allocation7 + $0x68] sm:$0xff] }
  0x42   :  { %284 = vmatprep.subr.bf16.mxu0 %v1524_v6  ;;  %v347_v24 = vld [vmem:[#allocation7 + $0xa0] sm:$0xff]  ;;  %1138 = vmatpush1.bf16.msra.mxu1 %v1377_v21  ;;  %v328_v6 = vld [vmem:[#allocation7 + $0x8] sm:$0xff]  ;;  %v1563_v19 = vld [vmem:[#allocation2] ss:$8 sps:$4 sm:$0xff]  }
  0x43   :  { %1139 = vmatprep.subr.bf16.mxu1 %v1386_v22  ;;  %v1394_v28 = vcombine.high %v343_v23, %v347_v24  ;;  %v351_v29 = vld [vmem:[#allocation7 + $0xc0] sm:$0xff]  ;;  %v1393_v32 = vcombine.low %v343_v23, %v347_v24  ;;  %v1388_v22 = vcombine.high %v336_v14, %v340_v16  ;;  %v344_v23 = vld [vmem:[#allocation7 + $0x88] sm:$0xff] }
  0x44   :  { %v355_v30 = vld [vmem:[#allocation7 + $0xe0] sm:$0xff] }
  0x45   :  { %285 = vmatpush1.bf16.msra.mxu0 %v1526_v7  ;;  %v1541_v31 = vld [vmem:[#allocation5 + $0x80] ss:$8 sps:$4 sm:$0xff]   ;;  %v1402_v34 = vcombine.high %v351_v29, %v355_v30  ;;  %v1401_v38 = vcombine.low %v351_v29, %v355_v30  ;;  %v1545_v39 = vld [vmem:[#allocation5 + $0xa4] ss:$8 sps:$4 sm:$0xff]  }
  0x46   :  { %286 = vmatprep.subr.bf16.mxu0 %v1527_v8  ;;  %1140 = vmatpush1.bf16.msra.mxu1 %v1385_v26  ;;  %v359_v35 = vld [vmem:[#allocation7 + $0x100] sm:$0xff]  ;;  %v332_v8 = vld [vmem:[#allocation7 + $0x28] sm:$0xff] }
  0x47   :  { %1141 = vmatprep.subr.bf16.mxu1 %v1394_v28  ;;  %v363_v36 = vld [vmem:[#allocation7 + $0x120] sm:$0xff]  ;;  %v1380_v13 = vcombine.high %v328_v6, %v332_v8  ;;  %v1379_v20 = vcombine.low %v328_v6, %v332_v8  ;;  %v1387_v28 = vcombine.low %v336_v14, %v340_v16  ;;  %v420_v6 = vld [vmem:[#allocation7 + $0x2e8] sm:$0xff] }
  0x48   :  { %v1410_v40 = vcombine.high %v359_v35, %v363_v36  ;;  %v367_v41 = vld [vmem:[#allocation7 + $0x140] sm:$0xff]  ;;  %v1409_v44 = vcombine.low %v359_v35, %v363_v36  ;;  %v436_v14 = vld [vmem:[#allocation7 + $0x368] sm:$0xff] }
  0x49   :  { %287 = vmatpush1.bf16.msra.mxu0 %v1529_v9  ;;  %v371_v42 = vld [vmem:[#allocation7 + $0x160] sm:$0xff] }
  0x4a   :  { %288 = vmatprep.subr.bf16.mxu0 %v1530_v10  ;;  %1142 = vmatpush1.bf16.msra.mxu1 %v1393_v32  ;;  %v1547_v43 = vld [vmem:[#allocation5 + $0xa0] ss:$8 sps:$4 sm:$0xff]   ;;  %v1418_v46 = vcombine.high %v367_v41, %v371_v42  ;;  %v1417_v50 = vcombine.low %v367_v41, %v371_v42  ;;  %v1551_v51 = vld [vmem:[#allocation5 + $0xc4] ss:$8 sps:$4 sm:$0xff]  }
  0x4b   :  { %1143 = vmatprep.subr.bf16.mxu1 %v1402_v34  ;;  %v375_v47 = vld [vmem:[#allocation7 + $0x180] sm:$0xff]  ;;  %v364_v41 = vld [vmem:[#allocation7 + $0x128] sm:$0xff] }
  0x4c   :  { %v379_v48 = vld [vmem:[#allocation7 + $0x1a0] sm:$0xff] }
  0x4d   :  { %289 = vmatpush1.bf16.msra.mxu0 %v1532_v11  ;;  %v1426_v52 = vcombine.high %v375_v47, %v379_v48  ;;  %v383_v53 = vld [vmem:[#allocation7 + $0x1c0] sm:$0xff]  ;;  %v1425_v56 = vcombine.low %v375_v47, %v379_v48  ;;  %v1562_v11 = vld [vmem:[#allocation5 + $0xf0] ss:$8 sps:$4 sm:$0xff]  }
  0x4e   :  { %290 = vmatprep.subr.bf16.mxu0 %v1533_v12  ;;  %1144 = vmatpush1.bf16.msra.mxu1 %v1401_v38  ;;  %v387_v54 = vld [vmem:[#allocation7 + $0x1e0] sm:$0xff] }
  0x4f   :  { %1145 = vmatprep.subr.bf16.mxu1 %v1410_v40  ;;  %v1553_v55 = vld [vmem:[#allocation5 + $0xc0] ss:$8 sps:$4 sm:$0xff]   ;;  %v1434_v58 = vcombine.high %v383_v53, %v387_v54  ;;  %v1433_v62 = vcombine.low %v383_v53, %v387_v54  ;;  %v1557_v63 = vld [vmem:[#allocation5 + $0xe4] ss:$8 sps:$4 sm:$0xff]  }
  0x50   :  { %v391_v59 = vld [vmem:[#allocation7 + $0x200] sm:$0xff]  ;;  %v360_v40 = vld [vmem:[#allocation7 + $0x108] sm:$0xff] }
  0x51   :  { %291 = vmatpush1.bf16.msra.mxu0 %v1535_v15  ;;  %v395_v60 = vld [vmem:[#allocation7 + $0x220] sm:$0xff]  ;;  %v1411_v47 = vcombine.low %v360_v40, %v364_v41  ;;  %v384_v53 = vld [vmem:[#allocation7 + $0x1c8] sm:$0xff] }
  0x52   :  { %292 = vmatprep.subr.bf16.mxu0 %v1536_v17  ;;  %1146 = vmatpush1.bf16.msra.mxu1 %v1409_v44  ;;  %v1442_v0 = vcombine.high %v391_v59, %v395_v60  ;;  %v399_v1 = vld [vmem:[#allocation7 + $0x240] sm:$0xff]  ;;  %v1441_v4 = vcombine.low %v391_v59, %v395_v60  ;;  %v1412_v44 = vcombine.high %v360_v40, %v364_v41  ;;  %v388_v54 = vld [vmem:[#allocation7 + $0x1e8] sm:$0xff] }
  0x53   :  { %1147 = vmatprep.subr.bf16.mxu1 %v1418_v46  ;;  %v403_v2 = vld [vmem:[#allocation7 + $0x260] sm:$0xff]  ;;  %v372_v46 = vld [vmem:[#allocation7 + $0x168] sm:$0xff]  ;;  %v1435_v59 = vcombine.low %v384_v53, %v388_v54 }
  0x54   :  { %v1559_v3 = vld [vmem:[#allocation5 + $0xe0] ss:$8 sps:$4 sm:$0xff]   ;;  %v1450_v7 = vcombine.high %v399_v1, %v403_v2  ;;  %v1449_v12 = vcombine.low %v399_v1, %v403_v2 }
  0x55   :  { %293 = vmatpush1.bf16.msra.mxu0 %v1538_v25  ;;  %v407_v9 = vld [vmem:[#allocation7 + $0x280] sm:$0xff]  ;;  %v348_v25 = vld [vmem:[#allocation7 + $0xa8] sm:$0xff] }
  0x56   :  { %294 = vmatprep.subr.bf16.mxu0 %v1539_v27  ;;  %1148 = vmatpush1.bf16.msra.mxu1 %v1417_v50  ;;  %v411_v10 = vld [vmem:[#allocation7 + $0x2a0] sm:$0xff]  ;;  %v1396_v30 = vcombine.high %v344_v23, %v348_v25  ;;  %v1395_v36 = vcombine.low %v344_v23, %v348_v25  ;;  %v380_v50 = vld [vmem:[#allocation7 + $0x1a8] sm:$0xff] }
  0x57   :  { %1149 = vmatprep.subr.bf16.mxu1 %v1426_v52  ;;  %v1458_v15 = vcombine.high %v407_v9, %v411_v10  ;;  %v415_v17 = vld [vmem:[#allocation7 + $0x2c0] sm:$0xff]  ;;  %v1457_v21 = vcombine.low %v407_v9, %v411_v10  ;;  %v408_v1 = vld [vmem:[#allocation7 + $0x288] sm:$0xff] }
  0x58   :  { %v419_v18 = vld [vmem:[#allocation7 + $0x2e0] sm:$0xff]  ;;  %v412_v2 = vld [vmem:[#allocation7 + $0x2a8] sm:$0xff] }
  0x59   :  { %295 = vmatpush1.bf16.msra.mxu0 %v1541_v31  ;;  %v1466_v24 = vcombine.high %v415_v17, %v419_v18  ;;  %v423_v26 = vld [vmem:[#allocation7 + $0x300] sm:$0xff]  ;;  %v1465_v29 = vcombine.low %v415_v17, %v419_v18  ;;  %v352_v31 = vld [vmem:[#allocation7 + $0xc8] sm:$0xff] }
  0x5a   :  { %296 = vmatprep.subr.bf16.mxu0 %v1542_v33  ;;  %1150 = vmatpush1.bf16.msra.mxu1 %v1425_v56  ;;  %v427_v27 = vld [vmem:[#allocation7 + $0x320] sm:$0xff]  ;;  %v356_v33 = vld [vmem:[#allocation7 + $0xe8] sm:$0xff]  ;;  %v1436_v56 = vcombine.high %v384_v53, %v388_v54 }
  0x5b   :  { %1151 = vmatprep.subr.bf16.mxu1 %v1434_v58  ;;  %v1474_v32 = vcombine.high %v423_v26, %v427_v27  ;;  %v431_v34 = vld [vmem:[#allocation7 + $0x340] sm:$0xff]  ;;  %v1404_v38 = vcombine.high %v352_v31, %v356_v33  ;;  %v1403_v42 = vcombine.low %v352_v31, %v356_v33  ;;  %v396_v58 = vld [vmem:[#allocation7 + $0x228] sm:$0xff] }
  0x5c   :  { %v435_v35 = vld [vmem:[#allocation7 + $0x360] sm:$0xff]  ;;  %v424_v9 = vld [vmem:[#allocation7 + $0x308] sm:$0xff] }
  0x5d   :  { %297 = vmatpush1.bf16.msra.mxu0 %v1544_v37  ;;  %v1473_v37 = vcombine.low %v423_v26, %v427_v27  ;;  %v428_v10 = vld [vmem:[#allocation7 + $0x328] sm:$0xff]  ;;  %v439_v18 = vld [vmem:[#allocation7 + $0x380] sm:$0xff] }
  0x5e   :  { %298 = vmatprep.subr.bf16.mxu0 %v1545_v39  ;;  %1152 = vmatpush1.bf16.msra.mxu1 %v1433_v62  ;;  %v1482_v39 = vcombine.high %v431_v34, %v435_v35  ;;  %v404_v62 = vld [vmem:[#allocation7 + $0x268] sm:$0xff]  ;;  %v447_v26 = vld [vmem:[#allocation7 + $0x3c0] sm:$0xff] }
  0x5f   :  { %1153 = vmatprep.subr.bf16.mxu1 %v1442_v0  ;;  %v451_v27 = vld [vmem:[#allocation7 + $0x3e0] sm:$0xff] }
  0x60   :  { %v1497_v33 = vcombine.low %v447_v26, %v451_v27 }
  0x61   :  { %299 = vmatpush1.bf16.msra.mxu0 %v1547_v43  ;;  %v1481_v43 = vcombine.low %v431_v34, %v435_v35  ;;  %v329_v34 = vld [vmem:[#allocation7 + $0x10] sm:$0xff] }
  0x62   :  { %300 = vmatprep.subr.bf16.mxu0 %v1548_v45  ;;  %1154 = vmatpush1.bf16.msra.mxu1 %v1441_v4  ;;  %v368_v45 = vld [vmem:[#allocation7 + $0x148] sm:$0xff]  ;;  %v1460_v4 = vcombine.high %v408_v1, %v412_v2  ;;  %v333_v35 = vld [vmem:[#allocation7 + $0x30] sm:$0xff] }
  0x63   :  { %1155 = vmatprep.subr.bf16.mxu1 %v1450_v7  ;;  %v1420_v48 = vcombine.high %v368_v45, %v372_v46  ;;  %v1459_v7 = vcombine.low %v408_v1, %v412_v2  ;;  %v342_v1 = vld [vmem:[#allocation7 + $0x78] sm:$0xff] }
  0x65   :  { %301 = vmatpush1.bf16.msra.mxu0 %v1550_v49  ;;  %v376_v49 = vld [vmem:[#allocation7 + $0x188] sm:$0xff] }
  0x66   :  { %302 = vmatprep.subr.bf16.mxu0 %v1551_v51  ;;  %1156 = vmatpush1.bf16.msra.mxu1 %v1449_v12  ;;  %v1419_v51 = vcombine.low %v368_v45, %v372_v46  ;;  %v1428_v52 = vcombine.high %v376_v49, %v380_v50  ;;  %v1476_v12 = vcombine.high %v424_v9, %v428_v10  ;;  %v96_v45 = vld [vmem:[%s1787_s2] sm:$0x3] }
  0x67   :  { %1157 = vmatprep.subr.bf16.mxu1 %v1458_v15  ;;  %v1475_v15 = vcombine.low %v424_v9, %v428_v10 }
  0x69   :  { %303 = vmatpush1.bf16.msra.mxu0 %v1553_v55  ;;  %v1427_v55 = vcombine.low %v376_v49, %v380_v50 }
  0x6a   :  { %304 = vmatprep.subr.bf16.mxu0 %v1554_v57  ;;  %1158 = vmatpush1.bf16.msra.mxu1 %v1457_v21  ;;  %v392_v57 = vld [vmem:[#allocation7 + $0x208] sm:$0xff] }
  0x6b   :  { %1159 = vmatprep.subr.bf16.mxu1 %v1466_v24  ;;  %v1444_v60 = vcombine.high %v392_v57, %v396_v58 }
  0x6d   :  { %305 = vmatpush1.bf16.msra.mxu0 %v1556_v61  ;;  %v400_v61 = vld [vmem:[#allocation7 + $0x248] sm:$0xff] }
  0x6e   :  { %306 = vmatprep.subr.bf16.mxu0 %v1557_v63  ;;  %1160 = vmatpush1.bf16.msra.mxu1 %v1465_v29  ;;  %v1443_v63 = vcombine.low %v392_v57, %v396_v58  ;;  %v1452_v0 = vcombine.high %v400_v61, %v404_v62  ;;  %v1498_v29 = vcombine.high %v447_v26, %v451_v27 }
  0x6f   :  { %1161 = vmatprep.subr.bf16.mxu1 %v1474_v32 }
  0x71   :  { %307 = vmatpush1.bf16.msra.mxu0 %v1559_v3  ;;  %v1451_v3 = vcombine.low %v400_v61, %v404_v62  ;;  %v337_v61 = vld [vmem:[#allocation7 + $0x50] sm:$0xff] }
  0x72   :  { %308 = vmatprep.subr.bf16.mxu0 %v1560_v5  ;;  %1162 = vmatpush1.bf16.msra.mxu1 %v1473_v37  ;;  %v416_v5 = vld [vmem:[#allocation7 + $0x2c8] sm:$0xff]  ;;  %v1382_v37 = vcombine.high %v329_v34, %v333_v35 }
  0x73   :  { %1163 = vmatprep.subr.bf16.mxu1 %v1482_v39  ;;  %v1468_v8 = vcombine.high %v416_v5, %v420_v6  ;;  %v1381_v39 = vcombine.low %v329_v34, %v333_v35 }
  0x75   :  { %309 = vmatpush1.bf16.msra.mxu0 %v1562_v11  ;;  %v1467_v11 = vcombine.low %v416_v5, %v420_v6  ;;  %v349_v6 = vld [vmem:[#allocation7 + $0xb0] sm:$0xff] }
  0x76   :  { %1180 = vmatprep.subr.bf16.mxu0 %v1380_v13  ;;  %1164 = vmatpush1.bf16.msra.mxu1 %v1481_v43  ;;  %v432_v13 = vld [vmem:[#allocation7 + $0x348] sm:$0xff] }
  0x77   :  { %v1484_v16 = vcombine.high %v432_v13, %v436_v14  ;;  %v1483_v17 = vcombine.low %v432_v13, %v436_v14  ;;  %v353_v13 = vld [vmem:[#allocation7 + $0xd0] sm:$0xff] }
  0x78   :  { %311 = vmatmul.mubr.bf16.vlgmr.msra.gmra.mrb[0].mxu0 %v1563_v19  ;;  %v443_v19 = vld [vmem:[#allocation7 + $0x3a0] sm:$0xff]  ;;  %v357_v14 = vld [vmem:[#allocation7 + $0xf0] sm:$0xff] }
  0x79   :  { %1181 = vmatpush1.bf16.msra.mxu0 %v1379_v20  ;;  %v440_v20 = vld [vmem:[#allocation7 + $0x388] sm:$0xff]  ;;  %v1490_v21 = vcombine.high %v439_v18, %v443_v19  ;;  %v1489_v25 = vcombine.low %v439_v18, %v443_v19  ;;  %v1406_v19 = vcombine.high %v353_v13, %v357_v14 }
  0x7a   :  { %1182 = vmatprep.subr.bf16.mxu0 %v1388_v22  ;;  %v444_v22 = vld [vmem:[#allocation7 + $0x3a8] sm:$0xff] }
  0x7b   :  { %v1491_v23 = vcombine.low %v440_v20, %v444_v22  ;;  %v1492_v24 = vcombine.high %v440_v20, %v444_v22  ;;  %1165 = vmatprep.subr.bf16.mxu1 %v1490_v21  ;;  %v361_v21 = vld [vmem:[#allocation7 + $0x110] sm:$0xff] }
  0x7c   :  { %1166 = vmatpush1.bf16.msra.mxu1 %v1489_v25  ;;  %v365_v22 = vld [vmem:[#allocation7 + $0x130] sm:$0xff]  ;;  %v1405_v25 = vcombine.low %v353_v13, %v357_v14 }
  0x7d   :  { %1183 = vmatpush1.bf16.msra.mxu0 %v1387_v28  ;;  %v448_v28 = vld [vmem:[#allocation7 + $0x3c8] sm:$0xff]  ;;  %1167 = vmatprep.subr.bf16.mxu1 %v1498_v29  ;;  %v1414_v27 = vcombine.high %v361_v21, %v365_v22  ;;  %v369_v29 = vld [vmem:[#allocation7 + $0x150] sm:$0xff] }
  0x7e   :  { %1184 = vmatprep.subr.bf16.mxu0 %v1396_v30  ;;  %v452_v30 = vld [vmem:[#allocation7 + $0x3e8] sm:$0xff] }
  0x7f   :  { %v1499_v31 = vcombine.low %v448_v28, %v452_v30  ;;  %v1500_v32 = vcombine.high %v448_v28, %v452_v30  ;;  %v373_v30 = vld [vmem:[#allocation7 + $0x170] sm:$0xff] }
  0x80   :  { %1168 = vmatpush1.bf16.msra.mxu1 %v1497_v33  ;;  %v1413_v33 = vcombine.low %v361_v21, %v365_v22  ;;  %v1422_v35 = vcombine.high %v369_v29, %v373_v30 }
  0x81   :  { %1185 = vmatpush1.bf16.msra.mxu0 %v1395_v36  ;;  %v330_v36 = vld [vmem:[#allocation7 + $0x18] sm:$0xff]  ;;  %1223 = vmatprep.subr.bf16.mxu1 %v1382_v37  ;;  %v377_v37 = vld [vmem:[#allocation7 + $0x190] sm:$0xff] }
  0x82   :  { %1186 = vmatprep.subr.bf16.mxu0 %v1404_v38  ;;  %v334_v38 = vld [vmem:[#allocation7 + $0x38] sm:$0xff] }
  0x83   :  { %v1383_v40 = vcombine.low %v330_v36, %v334_v38  ;;  %v1384_v41 = vcombine.high %v330_v36, %v334_v38  ;;  %v381_v38 = vld [vmem:[#allocation7 + $0x1b0] sm:$0xff] }
  0x85   :  { %1187 = vmatpush1.bf16.msra.mxu0 %v1403_v42  ;;  %v98_v42 = vlaneseq }
  0x86   :  { %1188 = vmatprep.subr.bf16.mxu0 %v1412_v44 }
  0x87   :  { %v1743_v43 = vshrl.u32 %v98_v42, 7 }
  0x89   :  { %1189 = vmatpush1.bf16.msra.mxu0 %v1411_v47  ;;  %v100_v44 = vsub.s32 0, %v1743_v43  ;;  %v104_v46 = vsub.s32 1, %v1743_v43 }
  0x8a   :  { %1190 = vmatprep.subr.bf16.mxu0 %v1420_v48 }
  0x8b   :  { %v101_v47 = vrot.slane %v96_v45, %v100_v44  ;;  %v105_v48 = vrot.slane %v96_v45, %v104_v46  ;;  %v1430_v45 = vcombine.high %v377_v37, %v381_v38 }
  0x8d   :  { %1191 = vmatpush1.bf16.msra.mxu0 %v1419_v51 }
  0x8e   :  { %1192 = vmatprep.subr.bf16.mxu0 %v1428_v52 }
  0x91   :  { %1193 = vmatpush1.bf16.msra.mxu0 %v1427_v55 }
  0x92   :  { %1194 = vmatprep.subr.bf16.mxu0 %v1436_v56 }
  0x95   :  { %1195 = vmatpush1.bf16.msra.mxu0 %v1435_v59 }
  0x96   :  { %1196 = vmatprep.subr.bf16.mxu0 %v1444_v60 }
  0x99   :  { %1197 = vmatpush1.bf16.msra.mxu0 %v1443_v63  ;;  %v341_v63 = vld [vmem:[#allocation7 + $0x70] sm:$0xff] }
  0x9a   :  { %1198 = vmatprep.subr.bf16.mxu0 %v1452_v0  ;;  %v338_v0 = vld [vmem:[#allocation7 + $0x58] sm:$0xff]  ;;  %v1389_v9 = vcombine.low %v337_v61, %v341_v63 }
  0x9b   :  { %v1392_v5 = vcombine.high %v338_v0, %v342_v1  ;;  %v1391_v10 = vcombine.low %v338_v0, %v342_v1  ;;  %v401_v1 = vld [vmem:[#allocation7 + $0x250] sm:$0xff] }
  0x9d   :  { %1199 = vmatpush1.bf16.msra.mxu0 %v1451_v3  ;;  %v345_v3 = vld [vmem:[#allocation7 + $0x90] sm:$0xff] }
  0x9e   :  { %1200 = vmatprep.subr.bf16.mxu0 %v1460_v4  ;;  %v1390_v4 = vcombine.high %v337_v61, %v341_v63 }
  0xa1   :  { %1201 = vmatpush1.bf16.msra.mxu0 %v1459_v7  ;;  %v346_v7 = vld [vmem:[#allocation7 + $0x98] sm:$0xff] }
  0xa2   :  { %1202 = vmatprep.subr.bf16.mxu0 %v1468_v8  ;;  %v350_v8 = vld [vmem:[#allocation7 + $0xb8] sm:$0xff] }
  0xa3   :  { %v1399_v18 = vcombine.low %v346_v7, %v350_v8 }
  0xa5   :  { %1203 = vmatpush1.bf16.msra.mxu0 %v1467_v11  ;;  %v1398_v11 = vcombine.high %v345_v3, %v349_v6 }
  0xa6   :  { %1204 = vmatprep.subr.bf16.mxu0 %v1476_v12  ;;  %v1400_v12 = vcombine.high %v346_v7, %v350_v8 }
  0xa9   :  { %1205 = vmatpush1.bf16.msra.mxu0 %v1475_v15  ;;  %v354_v15 = vld [vmem:[#allocation7 + $0xd8] sm:$0xff] }
  0xaa   :  { %1206 = vmatprep.subr.bf16.mxu0 %v1484_v16  ;;  %v358_v16 = vld [vmem:[#allocation7 + $0xf8] sm:$0xff] }
  0xab   :  { %v1408_v20 = vcombine.high %v354_v15, %v358_v16  ;;  %v1407_v26 = vcombine.low %v354_v15, %v358_v16 }
  0xad   :  { %1207 = vmatpush1.bf16.msra.mxu0 %v1483_v17  ;;  %v1397_v17 = vcombine.low %v345_v3, %v349_v6  ;;  %v402_v3 = vld [vmem:[#allocation7 + $0x258] sm:$0xff] }
  0xae   :  { %1208 = vmatprep.subr.bf16.mxu0 %v1492_v24  ;;  %v366_v24 = vld [vmem:[#allocation7 + $0x138] sm:$0xff] }
  0xb1   :  { %1209 = vmatpush1.bf16.msra.mxu0 %v1491_v23  ;;  %v362_v23 = vld [vmem:[#allocation7 + $0x118] sm:$0xff] }
  0xb2   :  { %1210 = vmatprep.subr.bf16.mxu0 %v1500_v32  ;;  %v1416_v28 = vcombine.high %v362_v23, %v366_v24  ;;  %v374_v32 = vld [vmem:[#allocation7 + $0x178] sm:$0xff]  ;;  %v1415_v34 = vcombine.low %v362_v23, %v366_v24 }
  0xb5   :  { %1211 = vmatpush1.bf16.msra.mxu0 %v1499_v31  ;;  %v370_v31 = vld [vmem:[#allocation7 + $0x158] sm:$0xff] }
  0xb6   :  { %1266 = vmatprep.subr.bf16.mxu0 %v1384_v41  ;;  %v1424_v36 = vcombine.high %v370_v31, %v374_v32  ;;  %v1421_v41 = vcombine.low %v369_v29, %v373_v30  ;;  %v1423_v42 = vcombine.low %v370_v31, %v374_v32 }
 0x14b   :  { %v312_v49 = vpop.f32.mrb[0].mxu0 }
 0x14c   :  { %v313_v50 = vadd.f32 %v312_v49, %v101_v47  ;;  %v314_v51 = vpop.f32.mrb[1].mxu0  ;;  %v389_v49 = vld [vmem:[#allocation7 + $0x1f0] sm:$0xff] }
 0x14d   :  { %v315_v52 = vadd.f32 %v314_v51, %v105_v48  ;;  %v316_v53 = vpop.f32.mrb[2].mxu0  ;;  %v390_v51 = vld [vmem:[#allocation7 + $0x1f8] sm:$0xff] }
 0x14e   :  { %v317_v54 = vadd.f32 %v316_v53, %v101_v47  ;;  %v318_v55 = vpop.f32.mrb[3].mxu0  ;;  %v321_v57 = vmax.f32 %v313_v50, 0.0  ;;  %v386_v50 = vld [vmem:[#allocation7 + $0x1d8] sm:$0xff] }
 0x14f   :  { %v319_v56 = vadd.f32 %v318_v55, %v105_v48  ;;  %v322_v59 = vmax.f32 %v315_v52, 0.0  ;;  %v385_v48 = vld [vmem:[#allocation7 + $0x1d0] sm:$0xff]  ;;  %v1429_v52 = vcombine.low %v377_v37, %v381_v38  ;;  %v1440_v55 = vcombine.high %v386_v50, %v390_v51 }
 0x150   :  { %v323_v58 = vmax.f32 %v317_v54, 0.0  ;;  %v1438_v54 = vcombine.high %v385_v48, %v389_v49  ;;  %v1439_v61 = vcombine.low %v386_v50, %v390_v51 }
 0x151   :  { %v324_v60 = vmax.f32 %v319_v56, 0.0  ;;  %v393_v56 = vld [vmem:[#allocation7 + $0x210] sm:$0xff] }
 0x152   :  { %v1754_v62 = vpack.c.bf16 %v323_v58, %v321_v57  ;;  %v397_v57 = vld [vmem:[#allocation7 + $0x230] sm:$0xff]  ;;  %v394_v58 = vld [vmem:[#allocation7 + $0x218] sm:$0xff] }
 0x153   :  { %v326_v2 = vpack.c.bf16 %v324_v60, %v322_v59  ;;  %v398_v59 = vld [vmem:[#allocation7 + $0x238] sm:$0xff]  ;;  %v1437_v60 = vcombine.low %v385_v48, %v389_v49  ;;  %v1446_v63 = vcombine.high %v393_v56, %v397_v57 }
 0x154   :  { %v1448_v0 = vcombine.high %v394_v58, %v398_v59  ;;  %v1447_v6 = vcombine.low %v394_v58, %v398_v59 }
 0x155   :  { %1169 = vmatprep.mubr.bf16.mxu1 %v326_v2  ;;  %1212 = vmatprep.mubr.bf16.mxu0 %v326_v2 }
 0x156   :  { %1170 = vmatmul.mubr.bf16.vlgmr.msra.gmra.mrb[0].mxu1 %v1754_v62  ;;  %1213 = vmatmul.mubr.bf16.vlgmr.msra.gmra.mrb[4].mxu0 %v1754_v62 }
 0x157   :  { %1224 = vmatpush1.bf16.msra.mxu1 %v1381_v39  ;;  %1267 = vmatpush1.bf16.msra.mxu0 %v1383_v40  ;;  %v378_v39 = vld [vmem:[#allocation7 + $0x198] sm:$0xff] }
 0x158   :  { %1255 = vmatprep.mubr.bf16.mxu1 %v326_v2  ;;  %1298 = vmatprep.mubr.bf16.mxu0 %v326_v2  ;;  %v382_v40 = vld [vmem:[#allocation7 + $0x1b8] sm:$0xff]  ;;  %v405_v2 = vld [vmem:[#allocation7 + $0x270] sm:$0xff] }
 0x159   :  { %1225 = vmatprep.subr.bf16.mxu1 %v1390_v4  ;;  %1268 = vmatprep.subr.bf16.mxu0 %v1392_v5  ;;  %v1432_v47 = vcombine.high %v378_v39, %v382_v40  ;;  %v1431_v53 = vcombine.low %v378_v39, %v382_v40  ;;  %v406_v4 = vld [vmem:[#allocation7 + $0x278] sm:$0xff]  ;;  %v1445_v5 = vcombine.low %v393_v56, %v397_v57 }
 0x15a   :  { %v1454_v7 = vcombine.high %v401_v1, %v405_v2  ;;  %v1456_v8 = vcombine.high %v402_v3, %v406_v4  ;;  %v1453_v13 = vcombine.low %v401_v1, %v405_v2  ;;  %v1455_v14 = vcombine.low %v402_v3, %v406_v4 }
 0x15b   :  { %1226 = vmatpush1.bf16.msra.mxu1 %v1389_v9  ;;  %1269 = vmatpush1.bf16.msra.mxu0 %v1391_v10  ;;  %v409_v9 = vld [vmem:[#allocation7 + $0x290] sm:$0xff]  ;;  %v471_v1 = vsub.s32 3, %v1743_v43 }
 0x15c   :  { %1227 = vmatprep.subr.bf16.mxu1 %v1398_v11  ;;  %1270 = vmatprep.subr.bf16.mxu0 %v1400_v12  ;;  %v413_v10 = vld [vmem:[#allocation7 + $0x2b0] sm:$0xff]  ;;  %v410_v11 = vld [vmem:[#allocation7 + $0x298] sm:$0xff] }
 0x15d   :  { %v414_v12 = vld [vmem:[#allocation7 + $0x2b8] sm:$0xff]  ;;  %v1462_v15 = vcombine.high %v409_v9, %v413_v10  ;;  %v1461_v21 = vcombine.low %v409_v9, %v413_v10 }
 0x15e   :  { %v1464_v16 = vcombine.high %v410_v11, %v414_v12  ;;  %v1463_v22 = vcombine.low %v410_v11, %v414_v12 }
 0x15f   :  { %1228 = vmatpush1.bf16.msra.mxu1 %v1397_v17  ;;  %1271 = vmatpush1.bf16.msra.mxu0 %v1399_v18  ;;  %v417_v17 = vld [vmem:[#allocation7 + $0x2d0] sm:$0xff] }
 0x160   :  { %1229 = vmatprep.subr.bf16.mxu1 %v1406_v19  ;;  %1272 = vmatprep.subr.bf16.mxu0 %v1408_v20  ;;  %v421_v18 = vld [vmem:[#allocation7 + $0x2f0] sm:$0xff]  ;;  %v418_v19 = vld [vmem:[#allocation7 + $0x2d8] sm:$0xff] }
 0x161   :  { %v422_v20 = vld [vmem:[#allocation7 + $0x2f8] sm:$0xff]  ;;  %v1470_v23 = vcombine.high %v417_v17, %v421_v18  ;;  %v1469_v29 = vcombine.low %v417_v17, %v421_v18 }
 0x162   :  { %v1472_v24 = vcombine.high %v418_v19, %v422_v20  ;;  %v1471_v30 = vcombine.low %v418_v19, %v422_v20  ;;  %v475_v19 = vsub.s32 4, %v1743_v43  ;;  %v483_v20 = vsub.s32 6, %v1743_v43 }
 0x163   :  { %1230 = vmatpush1.bf16.msra.mxu1 %v1405_v25  ;;  %1273 = vmatpush1.bf16.msra.mxu0 %v1407_v26  ;;  %v425_v25 = vld [vmem:[#allocation7 + $0x310] sm:$0xff] }
 0x164   :  { %1231 = vmatprep.subr.bf16.mxu1 %v1414_v27  ;;  %1274 = vmatprep.subr.bf16.mxu0 %v1416_v28  ;;  %v429_v26 = vld [vmem:[#allocation7 + $0x330] sm:$0xff]  ;;  %v426_v27 = vld [vmem:[#allocation7 + $0x318] sm:$0xff] }
 0x165   :  { %v430_v28 = vld [vmem:[#allocation7 + $0x338] sm:$0xff]  ;;  %v1478_v31 = vcombine.high %v425_v25, %v429_v26  ;;  %v1477_v37 = vcombine.low %v425_v25, %v429_v26 }
 0x166   :  { %v1480_v32 = vcombine.high %v426_v27, %v430_v28  ;;  %v1479_v38 = vcombine.low %v426_v27, %v430_v28 }
 0x167   :  { %1232 = vmatpush1.bf16.msra.mxu1 %v1413_v33  ;;  %1275 = vmatpush1.bf16.msra.mxu0 %v1415_v34  ;;  %v433_v33 = vld [vmem:[#allocation7 + $0x350] sm:$0xff] }
 0x168   :  { %1233 = vmatprep.subr.bf16.mxu1 %v1422_v35  ;;  %1276 = vmatprep.subr.bf16.mxu0 %v1424_v36  ;;  %v437_v34 = vld [vmem:[#allocation7 + $0x370] sm:$0xff]  ;;  %v434_v35 = vld [vmem:[#allocation7 + $0x358] sm:$0xff] }
 0x169   :  { %v438_v36 = vld [vmem:[#allocation7 + $0x378] sm:$0xff]  ;;  %v1486_v39 = vcombine.high %v433_v33, %v437_v34  ;;  %v1485_v48 = vcombine.low %v433_v33, %v437_v34 }
 0x16a   :  { %v1488_v40 = vcombine.high %v434_v35, %v438_v36  ;;  %v1487_v49 = vcombine.low %v434_v35, %v438_v36 }
 0x16b   :  { %1234 = vmatpush1.bf16.msra.mxu1 %v1421_v41  ;;  %1277 = vmatpush1.bf16.msra.mxu0 %v1423_v42  ;;  %v441_v41 = vld [vmem:[#allocation7 + $0x390] sm:$0xff] }
 0x16c   :  { %1235 = vmatprep.subr.bf16.mxu1 %v1430_v45  ;;  %1278 = vmatprep.subr.bf16.mxu0 %v1432_v47  ;;  %v445_v42 = vld [vmem:[#allocation7 + $0x3b0] sm:$0xff]  ;;  %v442_v45 = vld [vmem:[#allocation7 + $0x398] sm:$0xff] }
 0x16d   :  { %v446_v47 = vld [vmem:[#allocation7 + $0x3b8] sm:$0xff]  ;;  %v1494_v50 = vcombine.high %v441_v41, %v445_v42  ;;  %v1493_v56 = vcombine.low %v441_v41, %v445_v42 }
 0x16e   :  { %v1496_v51 = vcombine.high %v442_v45, %v446_v47  ;;  %v1495_v57 = vcombine.low %v442_v45, %v446_v47 }
 0x16f   :  { %1236 = vmatpush1.bf16.msra.mxu1 %v1429_v52  ;;  %1279 = vmatpush1.bf16.msra.mxu0 %v1431_v53  ;;  %v449_v52 = vld [vmem:[#allocation7 + $0x3d0] sm:$0xff] }
 0x170   :  { %1237 = vmatprep.subr.bf16.mxu1 %v1438_v54  ;;  %1280 = vmatprep.subr.bf16.mxu0 %v1440_v55  ;;  %v453_v53 = vld [vmem:[#allocation7 + $0x3f0] sm:$0xff]  ;;  %v450_v54 = vld [vmem:[#allocation7 + $0x3d8] sm:$0xff] }
 0x171   :  { %v454_v55 = vld [vmem:[#allocation7 + $0x3f8] sm:$0xff]  ;;  %v1502_v58 = vcombine.high %v449_v52, %v453_v53 }
 0x172   :  { %v1504_v59 = vcombine.high %v450_v54, %v454_v55 }
 0x173   :  { %1238 = vmatpush1.bf16.msra.mxu1 %v1437_v60  ;;  %1281 = vmatpush1.bf16.msra.mxu0 %v1439_v61  ;;  %v1501_v60 = vcombine.low %v449_v52, %v453_v53  ;;  %v1503_v61 = vcombine.low %v450_v54, %v454_v55 }
 0x174   :  { %1239 = vmatprep.subr.bf16.mxu1 %v1446_v63  ;;  %1282 = vmatprep.subr.bf16.mxu0 %v1448_v0  ;;  %v467_v63 = vsub.s32 2, %v1743_v43  ;;  %v455_v0 = vld [vmem:[%s1789_s4] sm:$0xff]  ;;  %s1667_s4 = smov [#allocation8]  }
 0x175   :  { %v460_v2 = vrot.slane %v455_v0, %v100_v44  ;;  %v464_v4 = vrot.slane %v455_v0, %v104_v46  ;;  %s1330_s8 = sshll.u32 %s1667_s4, 4  ;;  %s1331_s8 = int_to_ptr.vmem [resolvable:$true] %s1330_s8 }
 0x176   :  { %v468_v3 = vrot.slane %v455_v0, %v467_v63  ;;  %s1632_s9 = scalar_lea.vmem %s1331_s8, 2048  ;;  %p1637_p11 = scmp.lt.s32.totalorder %s1331_s8, %s1331_s8 }
 0x177   :  { %1240 = vmatpush1.bf16.msra.mxu1 %v1445_v5  ;;  %1283 = vmatpush1.bf16.msra.mxu0 %v1447_v6  ;;  %v472_v5 = vrot.slane %v455_v0, %v471_v1  ;;  %p1633_p10 = scmp.ne.s32.totalorder %s1331_s8, %s1632_s9  ;;  %p1638_p12 = scmp.lt.s32.totalorder %s1632_s9, %s1632_s9 }
 0x178   :  { %1241 = vmatprep.subr.bf16.mxu1 %v1454_v7  ;;  %1284 = vmatprep.subr.bf16.mxu0 %v1456_v8 }
 0x179   :  { %p1639_p13 = por %p1638_p12, %p1637_p11 }
 0x17b   :  { %1242 = vmatpush1.bf16.msra.mxu1 %v1453_v13  ;;  %1285 = vmatpush1.bf16.msra.mxu0 %v1455_v14  ;;  %p1640_p0 = pnand %p1639_p13, %p1633_p10 }
 0x17c   :  { %1243 = vmatprep.subr.bf16.mxu1 %v1462_v15  ;;  %1286 = vmatprep.subr.bf16.mxu0 %v1464_v16 }
 0x17f   :  { %1244 = vmatpush1.bf16.msra.mxu1 %v1461_v21  ;;  %1287 = vmatpush1.bf16.msra.mxu0 %v1463_v22  ;;  %v479_v21 = vsub.s32 5, %v1743_v43  ;;  %v487_v22 = vsub.s32 7, %v1743_v43 }
 0x180   :  { %1245 = vmatprep.subr.bf16.mxu1 %v1470_v23  ;;  %1288 = vmatprep.subr.bf16.mxu0 %v1472_v24  ;;  %v476_v23 = vrot.slane %v455_v0, %v475_v19  ;;  %v484_v24 = vrot.slane %v455_v0, %v483_v20 }
 0x181   :  { %v480_v25 = vrot.slane %v455_v0, %v479_v21  ;;  %v488_v26 = vrot.slane %v455_v0, %v487_v22 }
 0x183   :  { %1246 = vmatpush1.bf16.msra.mxu1 %v1469_v29  ;;  %1289 = vmatpush1.bf16.msra.mxu0 %v1471_v30 }
 0x184   :  { %1247 = vmatprep.subr.bf16.mxu1 %v1478_v31  ;;  %1290 = vmatprep.subr.bf16.mxu0 %v1480_v32 }
 0x187   :  { %1248 = vmatpush1.bf16.msra.mxu1 %v1477_v37  ;;  %1291 = vmatpush1.bf16.msra.mxu0 %v1479_v38 }
 0x188   :  { %1249 = vmatprep.subr.bf16.mxu1 %v1486_v39  ;;  %1292 = vmatprep.subr.bf16.mxu0 %v1488_v40 }
 0x18b   :  { %1250 = vmatpush1.bf16.msra.mxu1 %v1485_v48  ;;  %1293 = vmatpush1.bf16.msra.mxu0 %v1487_v49 }
 0x18c   :  { %1251 = vmatprep.subr.bf16.mxu1 %v1494_v50  ;;  %1294 = vmatprep.subr.bf16.mxu0 %v1496_v51 }
 0x18f   :  { %1252 = vmatpush1.bf16.msra.mxu1 %v1493_v56  ;;  %1295 = vmatpush1.bf16.msra.mxu0 %v1495_v57 }
 0x190   :  { %1253 = vmatprep.subr.bf16.mxu1 %v1502_v58  ;;  %1296 = vmatprep.subr.bf16.mxu0 %v1504_v59 }
 0x193   :  { %1254 = vmatpush1.bf16.msra.mxu1 %v1501_v60  ;;  %1297 = vmatpush1.bf16.msra.mxu0 %v1503_v61 }
 0x196   :  { %1256 = vmatmul.mubr.bf16.vlgmr.msra.gmra.mrb[4].mxu1 %v1754_v62  ;;  %1299 = vmatmul.mubr.bf16.vlgmr.msra.gmra.mrb[8].mxu0 %v1754_v62 }
 0x229   :  { %v1171_v6 = vpop.f32.mrb[0].mxu1  ;;  %v1214_v7 = vpop.f32.mrb[4].mxu0 }
 0x22a   :  { %v1172_v8 = vadd.f32 %v1171_v6, %v460_v2  ;;  %v1215_v62 = vadd.f32 %v1214_v7, %v468_v3  ;;  %v1173_v9 = vpop.f32.mrb[1].mxu1  ;;  %v1216_v10 = vpop.f32.mrb[5].mxu0 }
 0x22b   :  { %v1174_v11 = vadd.f32 %v1173_v9, %v464_v4  ;;  %v1217_v12 = vadd.f32 %v1216_v10, %v472_v5  ;;  %v1175_v13 = vpop.f32.mrb[2].mxu1  ;;  %v1218_v14 = vpop.f32.mrb[6].mxu0 }
 0x22c   :  { %1309 = vst [vmem:[#allocation8] sm:$0xff] %v1172_v8  ;;  %1311 = vst [vmem:[#allocation8 + $0x10] sm:$0xff] %v1215_v62  ;;  %v1176_v15 = vadd.f32 %v1175_v13, %v460_v2  ;;  %v1219_v16 = vadd.f32 %v1218_v14, %v468_v3  ;;  %v1177_v44 = vpop.f32.mrb[3].mxu1  ;;  %v1220_v17 = vpop.f32.mrb[7].mxu0 }
 0x22d   :  { %1310 = vst [vmem:[#allocation8 + $0x8] sm:$0xff] %v1174_v11  ;;  %1312 = vst [vmem:[#allocation8 + $0x18] sm:$0xff] %v1217_v12  ;;  %v1178_v46 = vadd.f32 %v1177_v44, %v464_v4  ;;  %v1221_v18 = vadd.f32 %v1220_v17, %v472_v5 }
 0x22e   :  { %1317 = vst [vmem:[#allocation8 + $0x40] sm:$0xff] %v1176_v15  ;;  %1319 = vst [vmem:[#allocation8 + $0x50] sm:$0xff] %v1219_v16 }
 0x22f   :  { %1318 = vst [vmem:[#allocation8 + $0x48] sm:$0xff] %v1178_v46  ;;  %1320 = vst [vmem:[#allocation8 + $0x58] sm:$0xff] %v1221_v18 }
 0x269   :  { %v1257_v27 = vpop.f32.mrb[4].mxu1  ;;  %v1300_v28 = vpop.f32.mrb[8].mxu0 }
 0x26a   :  { %v1258_v29 = vadd.f32 %v1257_v27, %v476_v23  ;;  %v1301_v30 = vadd.f32 %v1300_v28, %v484_v24  ;;  %v1259_v31 = vpop.f32.mrb[5].mxu1  ;;  %v1302_v32 = vpop.f32.mrb[9].mxu0 }
 0x26b   :  { %v1260_v33 = vadd.f32 %v1259_v31, %v480_v25  ;;  %v1303_v34 = vadd.f32 %v1302_v32, %v488_v26  ;;  %v1261_v35 = vpop.f32.mrb[6].mxu1  ;;  %v1304_v36 = vpop.f32.mrb[10].mxu0 }
 0x26c   :  { %1313 = vst [vmem:[#allocation8 + $0x20] sm:$0xff] %v1258_v29  ;;  %1315 = vst [vmem:[#allocation8 + $0x30] sm:$0xff] %v1301_v30  ;;  %v1262_v37 = vadd.f32 %v1261_v35, %v476_v23  ;;  %v1305_v43 = vadd.f32 %v1304_v36, %v484_v24  ;;  %v1263_v38 = vpop.f32.mrb[7].mxu1  ;;  %v1306_v39 = vpop.f32.mrb[11].mxu0 }
 0x26d   :  { %1314 = vst [vmem:[#allocation8 + $0x28] sm:$0xff] %v1260_v33  ;;  %1316 = vst [vmem:[#allocation8 + $0x38] sm:$0xff] %v1303_v34  ;;  %v1264_v40 = vadd.f32 %v1263_v38, %v480_v25  ;;  %v1307_v41 = vadd.f32 %v1306_v39, %v488_v26 }
 0x26e   :  { %1321 = vst [vmem:[#allocation8 + $0x60] sm:$0xff] %v1262_v37  ;;  %1323 = vst [vmem:[#allocation8 + $0x70] sm:$0xff] %v1305_v43 }
 0x26f   :  { %1322 = vst [vmem:[#allocation8 + $0x68] sm:$0xff] %v1264_v40  ;;  %1324 = vst [vmem:[#allocation8 + $0x78] sm:$0xff] %v1307_v41 }
 0x270   :  { %1643 = shalt.err (!%p1640_p0)
}
 0x271   :  { %s1644_s12 = scalar_lea.hbm %s1790_s5, 2048 }
 0x272   :  { %p1645_p1 = scmp.ne.s32.totalorder %s1790_s5, %s1644_s12  ;;  %p1648_p2 = scmp.lt.u32.totalorder %s1644_s12, %s1790_s5 }
 0x274   :  { %p1650_p3 = pnand %p1648_p2, %p1645_p1 }
 0x276   :  { %1653 = shalt.err (!%p1650_p3)
}
 0x277   :  { %s1668_s1 = smov 1024   ;;  %s1669_s17 = smov 64  }
 0x278   :  { %1336 = dma.vmem_to_hbm [thread:$0]  %s1331_s8, 2048, %s1790_s5, [#allocation4], %s1668_s1, %s1668_s1, %s1669_s17  }
 0x279   :  { %1658 = dma.done.wait [#allocation4], 2048  }
 0x27a   :  { %1659 = vsyncadd [#allocation4], 4294965248 }
 0x27b   :  { %1340 = vsyncpa [#allocation3], 1 }
 0x27c   :  { %1341 = vsyncpa [#allocation6], 1 }
 0x27d   :  { %1342 = vsyncpa [#allocation4], 1 }

</bundles_post_ra>
